<compile_context>
chip_gen: v5e
topology: v5e:2x2
jax: 0.10.0
libtpu: 0.0.40
codegen_flags: <defaults>
</compile_context>

<pallas_src>
import functools

import jax
import jax.numpy as jnp
from jax.experimental import pallas as pl
from jax.experimental.pallas import tpu as pltpu

_LANE = 128
_MAX_COLS = 2048
_TARGET_TILE_BYTES = 4 * 1024 * 1024      # per-block working set
_VMEM_LIMIT_BYTES = 48 * 1024 * 1024      # 2 in + 2 out bufs (16 MiB) + temps; < v7x 64 MiB
_MAX_MIN_BLOCK_BYTES = 8 * 1024 * 1024    # guard for pathological ragged row widths


def _nan_to_num_kernel(x_ref, o_ref, *, nan_value, posinf, neginf):
    x = x_ref[...]
    lo = jnp.asarray(neginf, x.dtype)
    hi = jnp.asarray(posinf, x.dtype)
    # clip maps +inf -> max, -inf -> min; the where (keyed on the ORIGINAL x)
    # replaces NaN regardless of what clip does with it.
    y = jnp.clip(x, lo, hi)
    o_ref[...] = jnp.where(jnp.isnan(x), jnp.asarray(nan_value, x.dtype), y)


def _round_up(n, m):
    return ((n + m - 1) // m) * m


def _choose_cols(total):
    # Largest lane-dense width (multiple of 128, <= 2048) dividing total.
    c = _MAX_COLS
    while c > _LANE:
        if total % c == 0:
            return c
        c //= 2
    return _LANE


def _slab_call(x2d, nan_value, posinf, neginf):
    """Run the elementwise kernel over a 2D view, tiling rows."""
    rows, cols = x2d.shape
    dtype = x2d.dtype
    itemsize = jnp.dtype(dtype).itemsize
    sublane = {4: 8, 2: 16, 1: 32}.get(itemsize, 8)
    cols_vmem = _round_up(cols, _LANE)  # lane padding of the VMEM layout

    target_rows = max(
        sublane,
        (_TARGET_TILE_BYTES // (cols_vmem * itemsize)) // sublane * sublane,
    )
    tile_rows = rows if rows <= target_rows else target_rows
    # Guarantee >= 2 grid steps whenever there is enough work so v7x's two
    # TensorCores both get a share of the "parallel" axis.
    if rows >= 2 * sublane and pl.cdiv(rows, tile_rows) < 2:
        tile_rows = _round_up(pl.cdiv(rows, 2), sublane)
    grid = (pl.cdiv(rows, tile_rows),)

    kernel = functools.partial(
        _nan_to_num_kernel, nan_value=nan_value, posinf=posinf, neginf=neginf,
    )
    return pl.pallas_call(
        kernel,
        out_shape=jax.ShapeDtypeStruct((rows, cols), dtype),
        grid=grid,
        in_specs=[pl.BlockSpec((tile_rows, cols), lambda i: (i, 0))],
        out_specs=pl.BlockSpec((tile_rows, cols), lambda i: (i, 0)),
        compiler_params=pltpu.CompilerParams(
            dimension_semantics=("parallel",),
            vmem_limit_bytes=_VMEM_LIMIT_BYTES,
        ),
    )(x2d)


def nan_to_num_pallas(x, num=0.0):
    """Pallas equivalent of torch.nan_to_num(x, nan=num)."""
    dtype = x.dtype
    # torch.nan_to_num is a no-op for integer / bool dtypes.
    if not jnp.issubdtype(dtype, jnp.floating):
        return x
    total = x.size
    if total == 0:
        return x
    if dtype == jnp.float64:
        # TODO(synk): TPU Pallas has no f64 path; use XLA's fused op instead.
        f = jnp.finfo(dtype)
        return jnp.nan_to_num(x, nan=float(num), posinf=float(f.max), neginf=float(f.min))

    finfo = jnp.finfo(dtype)
    nan_value = float(num)
    posinf = float(finfo.max)
    neginf = float(finfo.min)

    if total % _LANE == 0:
        # Fast path: lane-dense contiguous slab (cols is a multiple of 128).
        cols = _choose_cols(total)
        x2d = x.reshape(total // cols, cols)
        return _slab_call(x2d, nan_value, posinf, neginf).reshape(x.shape)

    # Ragged path: no padding / slicing copies.  Collapse leading dims and
    # keep the original last dim; a block whose last dim equals the full
    # array dim is legal even when it is not a multiple of 128.  One HBM pass.
    cols = x.shape[-1] if x.ndim >= 2 else total
    rows = total // cols
    itemsize = jnp.dtype(dtype).itemsize
    sublane = {4: 8, 2: 16, 1: 32}.get(itemsize, 8)
    min_block_bytes = _round_up(cols, _LANE) * itemsize * sublane
    if min_block_bytes > _MAX_MIN_BLOCK_BYTES:
        # Pathological ragged row width: even a minimal block would blow VMEM.
        # XLA's fused nan_to_num is also exactly one read+write pass.
        return jnp.nan_to_num(x, nan=nan_value, posinf=posinf, neginf=neginf)
    x2d = x.reshape(rows, cols)
    return _slab_call(x2d, nan_value, posinf, neginf).reshape(x.shape)


# jit: makes the surrounding reshapes free bitcasts and removes eager per-op
# dispatch.  Input is NOT donated here because callers may reuse x.
_nan_to_num_jit = jax.jit(nan_to_num_pallas, static_argnames=("num",))


class NanToNum:
    """JAX/Pallas port of the PyTorch NanToNum module (no parameters)."""

    def __init__(self, num=0.0):
        self.num = float(num)

    def __call__(self, x):
        return _nan_to_num_jit(x, num=self.num)


if __name__ == "__main__":
    module = NanToNum(num=0.0)
    finfo = jnp.finfo(jnp.float32)

    # ---- Primary check: NCHW activations (matches the module's use in UNet).
    key = jax.random.PRNGKey(0)
    N, C, H, W = 2, 4, 16, 16
    x = jax.random.normal(key, (N, C, H, W), dtype=jnp.float32)
    x = x.at[0, 0, 0, 0].set(jnp.nan)
    x = x.at[0, 1, 2, 3].set(jnp.inf)
    x = x.at[1, 3, 15, 15].set(-jnp.inf)
    x = x.at[1, 2, 7, 7].set(jnp.nan)

    out = jax.block_until_ready(module(x))
    ref = jnp.nan_to_num(x, nan=0.0, posinf=float(finfo.max), neginf=float(finfo.min))
    assert out.shape == x.shape and out.dtype == x.dtype
    assert bool(jnp.all(out == ref)), "mismatch vs reference (f32 NCHW)"
    assert not bool(jnp.any(jnp.isnan(out))), "NaNs remain"

    # ---- Multi-step path (grid >= 2): rows=512, cols=2048 -> 2 row tiles.
    xb = jax.random.normal(jax.random.PRNGKey(1), (8, 8, 128, 128), dtype=jnp.float32)
    xb = xb.at[0, 0, 0, 0].set(jnp.nan)
    xb = xb.at[7, 7, 127, 127].set(jnp.inf)
    xb = xb.at[3, 2, 64, 1].set(-jnp.inf)
    outb = jax.block_until_ready(module(xb))
    refb = jnp.nan_to_num(xb, nan=0.0, posinf=float(finfo.max), neginf=float(finfo.min))
    assert bool(jnp.all(outb == refb)), "mismatch vs reference (tiled f32)"

    # ---- Ragged path (size not a multiple of 128): single-pass, no pad copies.
    xc = jax.random.normal(jax.random.PRNGKey(2), (3, 5, 7), dtype=jnp.float32)
    xc = xc.at[1, 2, 3].set(jnp.nan)
    xc = xc.at[0, 0, 0].set(-jnp.inf)
    outc = jax.block_until_ready(module(xc))
    refc = jnp.nan_to_num(xc, nan=0.0, posinf=float(finfo.max), neginf=float(finfo.min))
    assert outc.shape == xc.shape
    assert bool(jnp.all(outc == refc)), "mismatch vs reference (ragged path)"

    # ---- Ragged + multi-step + masked last block.
    xe = jax.random.normal(jax.random.PRNGKey(3), (17, 33, 129), dtype=jnp.float32)
    xe = xe.at[0, 0, 0].set(jnp.nan)
    xe = xe.at[16, 32, 128].set(jnp.inf)
    xe = xe.at[5, 7, 11].set(-jnp.inf)
    oute = jax.block_until_ready(module(xe))
    refe = jnp.nan_to_num(xe, nan=0.0, posinf=float(finfo.max), neginf=float(finfo.min))
    assert bool(jnp.all(oute == refe)), "mismatch vs reference (ragged multi-tile)"

    # ---- bfloat16 path.
    xd = x.astype(jnp.bfloat16)
    outd = jax.block_until_ready(module(xd))
    binfo = jnp.finfo(jnp.bfloat16)
    refd = jnp.nan_to_num(xd, nan=0.0, posinf=float(binfo.max), neginf=float(binfo.min))
    assert outd.dtype == jnp.bfloat16
    assert bool(jnp.all(outd == refd)), "mismatch vs reference (bf16)"

    # ---- Integer passthrough (torch.nan_to_num is a no-op for ints).
    xi = jnp.arange(24, dtype=jnp.int32).reshape(2, 3, 4)
    outi = module(xi)
    assert outi.dtype == xi.dtype and bool(jnp.all(outi == xi))

    print("KERNEL_OK")
</pallas_src>

<mosaic_0001>
module attributes {stable_mosaic.version = 11 : i64} {
  func.func @_nan_to_num_kernel(%arg0: i32, %arg1: memref<1x2048xf32, #tpu.memory_space<vmem>>, %arg2: memref<1x2048xf32, #tpu.memory_space<vmem>>) attributes {dimension_semantics = [#tpu.dimension_semantics<parallel>], iteration_bounds = array<i64: 1>, scalar_prefetch = 0 : i64, scratch_operands = 0 : i64, tpu.core_type = #tpu.core_type<tc>, window_params = [{transform_indices = @transform_0, window_bounds = array<i64: 1, 2048>}, {transform_indices = @transform_1, window_bounds = array<i64: 1, 2048>}]} {
    %c0 = arith.constant 0 : index
    %c0_0 = arith.constant 0 : index
    %0 = vector.load %arg1[%c0, %c0_0] : memref<1x2048xf32, #tpu.memory_space<vmem>>, vector<1x2048xf32>
    %cst = arith.constant -3.40282347E+38 : f32
    %cst_1 = arith.constant 3.40282347E+38 : f32
    %1 = vector.broadcast %cst : f32 to vector<1x2048xf32>
    %2 = arith.maximumf %1, %0 : vector<1x2048xf32>
    %3 = vector.broadcast %cst_1 : f32 to vector<1x2048xf32>
    %4 = arith.minimumf %3, %2 : vector<1x2048xf32>
    %5 = arith.cmpf one, %0, %0 : vector<1x2048xf32>
    %cst_2 = arith.constant 0.000000e+00 : f32
    %6 = vector.broadcast %cst_2 : f32 to vector<1x2048xf32>
    %7 = arith.select %5, %6, %4 : vector<1x2048xi1>, vector<1x2048xf32>
    %c0_3 = arith.constant 0 : index
    %c0_4 = arith.constant 0 : index
    %8 = vector.load %arg2[%c0_3, %c0_4] : memref<1x2048xf32, #tpu.memory_space<vmem>>, vector<1x2048xf32>
    tpu.vector_store %arg2[%c0_3, %c0_4], %7 {strides = array<i32>} : memref<1x2048xf32, #tpu.memory_space<vmem>>, vector<1x2048xf32>,
    return
  }
  func.func @transform_0(%arg0: i32) -> (i32, i32) {
    %c0_i32 = arith.constant 0 : i32
    %c0_i32_0 = arith.constant 0 : i32
    return %arg0, %c0_i32 : i32, i32
  }
  func.func @transform_1(%arg0: i32) -> (i32, i32) {
    %c0_i32 = arith.constant 0 : i32
    %c0_i32_0 = arith.constant 0 : i32
    return %arg0, %c0_i32 : i32, i32
  }
}

</mosaic_0001>

<bundles_post_ra>
// kernel: nan_to_num_pallas.1
= control target key start
LH: loop header
LB: loop body
LE: loop exit
PB: predicated region body
PF: predicated region fallthrough
CT: control target
= control target key end

     0   :  { %s48_s0 = inlined_call_operand.vmem [shape: f32[1,2048], index: 0, kind: input, shape index: {}]   ;;  %s49_s1 = inlined_call_operand.vmem [shape: f32[1,2048], index: 1, kind: output, shape index: {}]  }
   0x1   :  { %v8_v0 = vld [vmem:[%s48_s0] sm:$0xff]  ;;  %v9_v1 = vld [vmem:[%s48_s0 + $0x8] sm:$0xff] }
   0x2   :  { %v24_v2 = vclamps-f32 %v8_v0, 3.4028235e+38  ;;  %vm14_vm0 = vcmp.ne.f32.partialorder %v8_v0, %v8_v0  ;;  %v25_v3 = vclamps-f32 %v9_v1, 3.4028235e+38  ;;  %vm15_vm1 = vcmp.ne.f32.partialorder %v9_v1, %v9_v1 }
   0x4   :  { %v16_v4 = vsel %vm14_vm0, 0.0, %v24_v2  ;;  %v17_v5 = vsel %vm15_vm1, 0.0, %v25_v3 }
   0x5   :  { %18 = vst [vmem:[%s49_s1] sm:$0xff] %v16_v4 }
   0x6   :  { %19 = vst [vmem:[%s49_s1 + $0x8] sm:$0xff] %v17_v5 }

</bundles_post_ra>
